<compile_context>
chip_gen: v7x
topology: tpu7x:2x2x1
jax: 0.10.0
libtpu: 0.0.40
codegen_flags: <defaults>
</compile_context>

<pallas_src>
import jax
import jax.numpy as jnp
from jax.experimental import pallas as pl
from jax.experimental.pallas import tpu as pltpu


def _nchw_to_nhwc_tanh_cat_kernel(x_ref, o_ref):
    """Fused NCHW->NHWC permute + tanh + concat.

    x_ref: (bn, C, H*W) input tile (NCHW orientation, spatial dims collapsed).
    o_ref: (2, bn, H*W, C); o_ref[0] = NHWC copy, o_ref[1] = tanh(NHWC).
    """
    xv = x_ref[...]                        # (bn, C, HW) f32
    xt = jnp.transpose(xv, (0, 2, 1))      # (bn, HW, C): minor-dims swap in VMEM (XLU)
    o_ref[0] = xt                          # pass-through half (out rows 0..N-1)
    o_ref[1] = jnp.tanh(xt)                # EUP transcendental (free slot, mem-bound kernel)


def model_forward(x):
    """x: (N, C, H, W) float32. Returns (2N, H, W, C) = cat([x_nhwc, tanh(x_nhwc)], 0)."""
    n, c, h, w = x.shape
    hw = h * w
    total = n * c * hw
    itemsize = x.dtype.itemsize

    # Free row-major collapse of the trailing spatial dims (no data movement).
    x3 = x.reshape(n, c, hw)

    # Samples per grid step: aim for ~2 MiB input blocks to amortize the
    # ~0.35 us/step overhead, keep the pipelined footprint (~6x the block,
    # inputs + 2x outputs, double-buffered) far under 32 MiB scoped VMEM on
    # v7x, and keep >=2 grid steps when N >= 2 so both v7x TCs get work.
    per_sample_bytes = c * hw * itemsize
    target_block_bytes = 2 * 1024 * 1024
    bn = max(1, min(n, target_block_bytes // max(per_sample_bytes, 1)))
    if n >= 2:
        bn = min(bn, pl.cdiv(n, 2))
    grid = (pl.cdiv(n, bn),)
    # TODO(synk): for huge per-sample H*W that cannot fit VMEM, H*W would need
    # its own grid axis; unnecessary at these sizes.

    cost = pl.CostEstimate(
        flops=0,
        transcendentals=total,                 # one tanh per element
        bytes_accessed=3 * total * itemsize,   # 1 read + 2 writes
    )

    out = pl.pallas_call(
        _nchw_to_nhwc_tanh_cat_kernel,
        out_shape=jax.ShapeDtypeStruct((2, n, hw, c), x.dtype),
        grid=grid,
        in_specs=[pl.BlockSpec((bn, c, hw), lambda i: (i, 0, 0))],
        out_specs=pl.BlockSpec((2, bn, hw, c), lambda i: (0, i, 0, 0)),
        compiler_params=pltpu.CompilerParams(
            dimension_semantics=("parallel",)),
        cost_estimate=cost,
    )(x3)

    # Row-major (2, N, H*W, C) == cat([x_nhwc, tanh(x_nhwc)], dim=0); this
    # reshape only splits/merges contiguous row-major dims (free).
    return out.reshape(2 * n, h, w, c)


if __name__ == "__main__":
    key = jax.random.PRNGKey(0)
    N, C, H, W = 2, 8, 4, 6
    x = jax.random.normal(key, (N, C, H, W), dtype=jnp.float32)

    out = model_forward(x)
    jax.block_until_ready(out)

    # reference check in plain JAX
    x_nhwc = jnp.transpose(x, (0, 2, 3, 1))
    ref = jnp.concatenate([x_nhwc, jnp.tanh(x_nhwc)], axis=0)
    assert out.shape == (2 * N, H, W, C), out.shape
    assert jnp.allclose(out, ref, atol=1e-6), "mismatch vs reference"

    print("KERNEL_OK")
</pallas_src>

<mosaic_0001>
module attributes {stable_mosaic.version = 11 : i64} {
  func.func @_nchw_to_nhwc_tanh_cat_kernel(%arg0: i32, %arg1: memref<1x8x24xf32, #tpu.memory_space<vmem>>, %arg2: memref<2x1x24x8xf32, #tpu.memory_space<vmem>>) attributes {dimension_semantics = [#tpu.dimension_semantics<parallel>], iteration_bounds = array<i64: 2>, scalar_prefetch = 0 : i64, scratch_operands = 0 : i64, tpu.core_type = #tpu.core_type<tc>, window_params = [{transform_indices = @transform_0, window_bounds = array<i64: 1, 8, 24>}, {transform_indices = @transform_1, window_bounds = array<i64: 2, 1, 24, 8>}]} {
    %c0 = arith.constant 0 : index
    %c0_0 = arith.constant 0 : index
    %c0_1 = arith.constant 0 : index
    %0 = vector.load %arg1[%c0, %c0_0, %c0_1] : memref<1x8x24xf32, #tpu.memory_space<vmem>>, vector<1x8x24xf32>
    %1 = tpu.transpose %0, [0, 2, 1] : vector<1x8x24xf32> -> vector<1x24x8xf32>
    %c0_2 = arith.constant 0 : index
    %c0_3 = arith.constant 0 : index
    %c0_4 = arith.constant 0 : index
    %c0_5 = arith.constant 0 : index
    %2 = vector.load %arg2[%c0_2, %c0_3, %c0_4, %c0_5] : memref<2x1x24x8xf32, #tpu.memory_space<vmem>>, vector<1x1x24x8xf32>
    %3 = vector.shape_cast %2 : vector<1x1x24x8xf32> to vector<1x24x8xf32>
    %4 = vector.shape_cast %1 : vector<1x24x8xf32> to vector<1x1x24x8xf32>
    tpu.vector_store %arg2[%c0_2, %c0_3, %c0_4, %c0_5], %4 {strides = array<i32>} : memref<2x1x24x8xf32, #tpu.memory_space<vmem>>, vector<1x1x24x8xf32>,
    %5 = math.tanh %1 : vector<1x24x8xf32>
    %c1 = arith.constant 1 : index
    %c0_6 = arith.constant 0 : index
    %c0_7 = arith.constant 0 : index
    %c0_8 = arith.constant 0 : index
    %6 = vector.load %arg2[%c1, %c0_6, %c0_7, %c0_8] : memref<2x1x24x8xf32, #tpu.memory_space<vmem>>, vector<1x1x24x8xf32>
    %7 = vector.shape_cast %6 : vector<1x1x24x8xf32> to vector<1x24x8xf32>
    %8 = vector.shape_cast %5 : vector<1x24x8xf32> to vector<1x1x24x8xf32>
    tpu.vector_store %arg2[%c1, %c0_6, %c0_7, %c0_8], %8 {strides = array<i32>} : memref<2x1x24x8xf32, #tpu.memory_space<vmem>>, vector<1x1x24x8xf32>,
    return
  }
  func.func @transform_0(%arg0: i32) -> (i32, i32, i32) {
    %c0_i32 = arith.constant 0 : i32
    %c0_i32_0 = arith.constant 0 : i32
    %c0_i32_1 = arith.constant 0 : i32
    return %arg0, %c0_i32, %c0_i32_0 : i32, i32, i32
  }
  func.func @transform_1(%arg0: i32) -> (i32, i32, i32, i32) {
    %c0_i32 = arith.constant 0 : i32
    %c0_i32_0 = arith.constant 0 : i32
    %c0_i32_1 = arith.constant 0 : i32
    %c0_i32_2 = arith.constant 0 : i32
    return %c0_i32, %arg0, %c0_i32_0, %c0_i32_1 : i32, i32, i32, i32
  }
}

</mosaic_0001>

<bundles_post_ra>
// kernel: tpu_custom_call.1
= control target key start
LH: loop header
LB: loop body
LE: loop exit
PB: predicated region body
PF: predicated region fallthrough
CT: control target
= control target key end

     0   :  { %6 = vsyncpa [#allocation3], 0  ;;  %s559_s0 = inlined_call_operand.hbm [shape: f32[2,8,24], index: 0, kind: input, shape index: {}]   ;;  %s560_s1 = inlined_call_operand.vmem [shape: f32[2,2,24,8], index: 1, kind: output, shape index: {}]  }
   0x1   :  { %8 = vsyncpa [#allocation3 + $0x1], 0  ;;  %s434_s6 = smov 0   ;;  %s436_s7 = smov 0  }
   0x2   :  { %s438_s8 = smov 0   ;;  %s440_s9 = smov 0  }
   0x3 LB: > { %s453_s10 = sadd.s32 4294967295, %s421_s9   ;;  %s456_s11 = sadd.s32 1, %s421_s9   ;;  %s421_s9 = sphi %s440_s9, %s571_s9   ;;  %s417_s8 = sphi %s438_s8, %s570_s8   ;;  %s413_s7 = sphi %s436_s7, %s569_s7   ;;  %s409_s6 = sphi %s434_s6, %s568_s6  }
   0x4   : > { %s18_s12 = ssub.s32 %s421_s9, %s456_s11  ;;  %s21_s13 = sadd.s32 1, %s417_s8 }
   0x5   : > { %p19_p0 = scmp.eq.s32.totalorder %s18_s12, 0  ;;  %p28_p1 = scmp.ne.s32.totalorder %s417_s8, %s413_s7 }
   0x6   : > { %p29_p2 = scmp.eq.s32.totalorder %s421_s9, 0  ;;  %p34_p3 = scmp.ne.s32.totalorder %s413_s7, %s409_s6 }
   0x7   : > { %s466_s14 = scalar_select %p19_p0, %s417_s8, %s21_s13  }
   0x8   : > { %p468_p4 = por %p29_p2, %p28_p1  ;;  %p35_p5 = scmp.eq.s32.totalorder %s453_s10, 0 }
   0x9   : > { %p58_p6 = scmp.eq.s32.totalorder %s453_s10, 1  ;;  %p317_p8 = scmp.lt.s32.totalorder %s421_s9, 2 }
   0xa   : > { %p474_p7 = por %p35_p5, %p34_p3  ;;  %s84_s18 = sand.u32 1, %s417_s8  }
   0xb   : > { %p479_p9 = por %p58_p6, %p28_p1  ;;  %s299_s19 = sshll.u32 %s84_s18, 3 }
   0xc   : > { %s300_s20 = sshll.u32 %s421_s9, 7  ;;  %s88_s24 = scalar_lea.vmem [#allocation2], %s299_s19 }
   0xd   : > { %s563_s17 = scalar_select %p479_p9, 1, 0 }
   0xe   : > { %s488_s23 = scalar_lea.hbm %s559_s0, %s300_s20  ;;  %s95_s25 = sshll.u32 %s88_s24, 4  ;;  %s490_s25 = int_to_ptr.vmem [resolvable:$true] %s95_s25 }
   0xf   : > { %p494_p10 = pnand %p317_p8, %p468_p4  ;;  %s85_s27 = scalar_lea.sflag [#allocation3], %s84_s18 }
  0x10   : > { %s357_s28 = scalar_lea.hbm %s488_s23, 128  ;;  %s362_s2 = scalar_lea.hbm %s559_s0, 256 }
  0x11   : > { %p358_p13 = scmp.ne.s32.totalorder %s488_s23, %s357_s28  ;;  %p359_p0 = pneg %p494_p10 }
  0x12   : > { %p363_p3 = scmp.lt.u32.totalorder %s488_s23, %s559_s0  ;;  %p364_p4 = scmp.lt.u32.totalorder %s362_s2, %s357_s28 }
  0x13   : > { %p360_p1 = pnand %p359_p0, %p358_p13  ;;  %p366_p6 = scmp.lt.u32.totalorder %s357_s28, %s488_s23 }
  0x14   : > { %p365_p5 = por %p364_p4, %p363_p3 }
  0x15   : > { %p361_p2 = pneg %p360_p1 }
  0x16   : > { %p367_p8 = por %p366_p6, %p365_p5 }
  0x18   : > { %p368_p11 = pnand %p367_p8, %p361_p2 }
  0x1a   : > { %371 = shalt.err (!%p368_p11)
}
  0x1b   : > { %s372_s5 = scalar_lea.vmem %s490_s25, 128  ;;  %s423_s6 = smov [#allocation2]  }
  0x1c   : > { %p373_p13 = scmp.ne.s32.totalorder %s490_s25, %s372_s5  ;;  %s377_s12 = sshll.u32 %s423_s6, 4  ;;  %s378_s12 = int_to_ptr.vmem [resolvable:$false] %s377_s12 }
  0x1d   : > { %s379_s13 = scalar_lea.vmem %s378_s12, 256  ;;  %p380_p9 = scmp.lt.s32.totalorder %s490_s25, %s378_s12 }
  0x1e   : > { %p375_p1 = pnand %p373_p13, %p359_p0  ;;  %p381_p3 = scmp.lt.s32.totalorder %s379_s13, %s372_s5 }
  0x20   : > { %p376_p12 = pneg %p375_p1  ;;  %p382_p4 = por %p381_p3, %p380_p9 }
  0x22   : > { %p383_p5 = pnand %p382_p4, %p376_p12 }
  0x24   : > { %386 = shalt.err (!%p383_p5)
}
  0x25   : > { %316 = dma.hbm_to_vmem [thread:$0]  (!%p494_p10), %s488_s23, 128, %s490_s25, %s85_s27  }
  0x26   : > { %p565_p11 = scmp.lt.s32.totalorder %s421_s9, 3  ;;  %p566_p2 = scmp.ge.s32.totalorder %s421_s9, 1 }
  0x28   : > { %p101_p0 = pnand %p566_p2, %p565_p11 }
  0x29   : > { %s106_s15 = sand.u32 (!%p101_p0), 1, %s413_s7  }
  0x2a   : > { %104 = sbr.rel (%p101_p0) target bundleno = 208 (0xd0), region = 24  ;;  %s302_s18 = sshll.u32 (!%p101_p0), %s106_s15, 3 }
  0x2b   : > { %s107_s19 = scalar_lea.sflag (!%p101_p0), [#allocation3], %s106_s15  ;;  %s110_s20 = scalar_lea.vmem (!%p101_p0), [#allocation2], %s302_s18 }
  0x31   : > { %404 = dma.done.wait (%p474_p7), %s107_s19, 128  }
  0x32   : > { %406 = vsyncadd (%p474_p7), %s107_s19, 4294967168  ;;  %v128_v0 = vld [vmem:[%s110_s20] sm:$0xff]  ;;  %s309_s21 = smul.u32 48, %s106_s15  ;;  %vm161_vm0 = vcmask 64512   ;;  %p567_p7 = scmp.ne.s32.totalorder %s563_s17, 0 }
  0x33   : > { %129 = vxpose.xlu0.b32.start.end [1/1] (short) (narrow) %v128_v0, 24  ;;  %s310_s9 = smul.u32 (%p567_p7), 24, %s453_s10 }
  0x34   : > { %s127_s22 = scalar_lea.vmem [#allocation4], %s309_s21 }
  0x35   : > { %s181_s24 = scalar_lea.vmem (%p567_p7), %s560_s1, %s310_s9 }
  0xb3   : > { %v145_v1 = vpop.trf.xlu0 }
  0xb4   : > { %162 = vst.msk [vmem:[%s127_s22] sm:$0xff] %vm161_vm0, %v145_v1  ;;  %351 = vtanh.f32 %v145_v1 }
  0xb7   : > { %v146_v2 = vpop.trf.xlu0 }
  0xb8   : > { %163 = vst.msk [vmem:[%s127_s22 + $0x8] sm:$0xff] %vm161_vm0, %v146_v2  ;;  %353 = vtanh.f32 %v146_v2 }
  0xbb   : > { %v147_v3 = vpop.trf.xlu0  ;;  %v219_v7 = vld [vmem:[%s127_s22] sm:$0xff] (%p567_p7) }
  0xbc   : > { %164 = vst.msk [vmem:[%s127_s22 + $0x10] sm:$0xff] %vm161_vm0, %v147_v3  ;;  %355 = vtanh.f32 %v147_v3  ;;  %220 = vst [vmem:[%s181_s24] sm:$0xff] (%p567_p7), %v219_v7 }
  0xbe   : > { %v352_v4 = vpop.eup %351 }
  0xbf   : > { %303 = vst.msk [vmem:[%s127_s22 + $0x18] sm:$0xff] %vm161_vm0, %v352_v4  ;;  %v221_v8 = vld [vmem:[%s127_s22 + $0x8] sm:$0xff] (%p567_p7) }
  0xc0   : > { %222 = vst [vmem:[%s181_s24 + $0x8] sm:$0xff] (%p567_p7), %v221_v8 }
  0xc1   : > { %178 = sbr.rel (!%p567_p7) target bundleno = 208 (0xd0), region = 32 }
  0xc2   : > { %v354_v5 = vpop.eup %353 }
  0xc3   : > { %304 = vst.msk [vmem:[%s127_s22 + $0x20] sm:$0xff] %vm161_vm0, %v354_v5  ;;  %v223_v9 = vld [vmem:[%s127_s22 + $0x10] sm:$0xff] (%p567_p7) }
  0xc4   : > { %224 = vst [vmem:[%s181_s24 + $0x10] sm:$0xff] (%p567_p7), %v223_v9 }
  0xc6   : > { %v356_v6 = vpop.eup %355  ;;  %v225_v10 = vld [vmem:[%s127_s22 + $0x18] sm:$0xff] (%p567_p7) }
  0xc7   : > { %305 = vst.msk [vmem:[%s127_s22 + $0x28] sm:$0xff] %vm161_vm0, %v356_v6  ;;  %226 = vst [vmem:[%s181_s24 + $0x30] sm:$0xff] (%p567_p7), %v225_v10 }
  0xca   : > { %v227_v11 = vld [vmem:[%s127_s22 + $0x20] sm:$0xff] }
  0xcb   : > { %228 = vst [vmem:[%s181_s24 + $0x38] sm:$0xff] %v227_v11 }
  0xce   : > { %v229_v12 = vld [vmem:[%s127_s22 + $0x28] sm:$0xff] }
  0xcf   : > { %230 = vst [vmem:[%s181_s24 + $0x40] sm:$0xff] %v229_v12 }
  0xd0 PF: > { %p11_p9 = scmp.ge.s32.totalorder %s456_s11, 4   ;;  %s568_s6 = smov %s413_s7 }
  0xd1   : > { %s569_s7 = smov %s417_s8  ;;  %s570_s8 = smov %s466_s14 }
  0xd2   : > { %s571_s9 = smov %s456_s11  ;;  %13 = sbr.rel (!%p11_p9) target bundleno = 3 (0x3), region = 103 }
  0xd9   :  { %246 = vsyncpa [#allocation3], 1 }
  0xda   :  { %248 = vsyncpa [#allocation3 + $0x1], 1 }

</bundles_post_ra>
